<compile_context>
chip_gen: v6e
topology: v6e:2x2x1
jax: 0.10.0
libtpu: 0.0.40
codegen_flags: <defaults>
</compile_context>

<pallas_src>
import jax
import jax.numpy as jnp
from jax.experimental import pallas as pl
from jax.experimental.pallas import tpu as pltpu


_LANE = 128
_SUBLANE = 8
_MAX_LANE_TILE = 8192                  # lanes per flat tile (32 KiB f32 per row)
_TARGET_TILE_BYTES = 4 * 1024 * 1024   # ~4 MiB per (double-buffered) buffer


def _round_up(x, m):
    return (x + m - 1) // m * m


def _pick_flat_tiles(B, F, itemsize, target_bytes):
    """Tile sizes for the flattened (B, F) elementwise problem."""
    # Lane axis: full width when it fits one tile (block dim == array dim, so
    # exempt from the /128 rule); otherwise a 128-aligned tile with a masked
    # ragged tail handled by Pallas.
    TF = F if F <= _MAX_LANE_TILE else _MAX_LANE_TILE
    # Batch (sublane) axis: fatten each grid step toward target_bytes.
    rows_cap = max(_SUBLANE, target_bytes // max(1, TF * itemsize))
    if B <= rows_cap:
        TB = B                        # block dim == full array dim
        # Keep >= 2 batch-axis grid steps (megacore sharding on v7x) when the
        # tile is already large enough that splitting costs nothing.
        if B >= 2 * _SUBLANE and B * TF * itemsize >= target_bytes:
            TB = _round_up(-(-B // 2), _SUBLANE)
    else:
        TB = max(_SUBLANE, (rows_cap // _SUBLANE) * _SUBLANE)
    return TB, TF


def _pick_3d_tiles(B, N, itemsize, target_bytes):
    """Tile sizes for the (B, N, N) path (N % 128 == 0)."""
    slab_bytes = N * N * itemsize          # one full (N, N) adjacency matrix
    if slab_bytes <= target_bytes:
        tN = N
        TB = min(B, max(1, target_bytes // slab_bytes))
        # Bias toward >= 2 batch-axis steps for dual-TensorCore chips.
        if TB == B and B >= 2 and B * slab_bytes >= target_bytes:
            TB = -(-B // 2)
    else:
        TB = 1
        tN = min(N, max(_SUBLANE,
                        (target_bytes // (N * itemsize)) // _SUBLANE * _SUBLANE))
    return TB, tN


def _predict_A_kernel_2d(seta_ref, ev_ref, a_ref, out_ref):
    # seta_ref: (1, TF), ev_ref: (TB, 1), a_ref/out_ref: (TB, TF)
    out_ref[...] = seta_ref[...] * ev_ref[...] + a_ref[...]


def _predict_A_kernel_3d(seta_ref, ev_ref, a_ref, out_ref):
    # seta_ref: (tN, N), ev_ref: (TB, 1, 1), a_ref/out_ref: (TB, tN, N)
    out_ref[...] = seta_ref[...][None, :, :] * ev_ref[...] + a_ref[...]


def predict_A_forward(seta, A_last, event_list, *,
                      target_tile_bytes=_TARGET_TILE_BYTES,
                      donate_a_last=False):
    """seta: [N, N], A_last: [B, N, N], event_list: [B] -> [B, N, N]."""
    B, N, N2 = A_last.shape
    assert N == N2, "A_last must be [B, N, N]"
    dtype = A_last.dtype
    itemsize = jnp.dtype(dtype).itemsize

    seta = seta.astype(dtype)              # tiny; keeps big-tensor dtype (bf16 ok)
    ev = event_list.astype(dtype)

    compiler_params = pltpu.CompilerParams(
        dimension_semantics=("parallel", "parallel"),
        vmem_limit_bytes=32 * 1024 * 1024,   # safe on v5e/v6e/v7x scoped limits
    )
    # Alias A_last onto the output only when the caller actually donates it;
    # otherwise XLA would insert a defensive copy.
    io_alias = {2: 0} if donate_a_last else {}

    if N % _LANE == 0:
        # ---- 3-D path: no relayout reshape of the big (B, N, N) tensor. ----
        TB, tN = _pick_3d_tiles(B, N, itemsize, target_tile_bytes)
        grid = (pl.cdiv(N, tN), pl.cdiv(B, TB))       # node tiles outer, batch inner
        ev3 = ev.reshape(B, 1, 1)
        return pl.pallas_call(
            _predict_A_kernel_3d,
            out_shape=jax.ShapeDtypeStruct((B, N, N), dtype),
            grid_spec=pltpu.PrefetchScalarGridSpec(
                num_scalar_prefetch=0,
                grid=grid,
                in_specs=[
                    pl.BlockSpec((tN, N), lambda n, b: (n, 0)),         # seta
                    pl.BlockSpec((TB, 1, 1), lambda n, b: (b, 0, 0)),   # events
                    pl.BlockSpec((TB, tN, N), lambda n, b: (b, n, 0)),  # A_last
                ],
                out_specs=pl.BlockSpec((TB, tN, N), lambda n, b: (b, n, 0)),
            ),
            compiler_params=compiler_params,
            input_output_aliases=io_alias,
        )(seta, ev3, A_last)

    # ---- Flat path (small / lane-unaligned N): lane-dense (B, N*N) view. ----
    F = N * N
    seta_flat = seta.reshape(1, F)
    a_flat = A_last.reshape(B, F)
    ev2 = ev.reshape(B, 1)

    TB, TF = _pick_flat_tiles(B, F, itemsize, target_tile_bytes)
    grid = (pl.cdiv(F, TF), pl.cdiv(B, TB))           # lane tiles outer, batch inner

    out_flat = pl.pallas_call(
        _predict_A_kernel_2d,
        out_shape=jax.ShapeDtypeStruct((B, F), dtype),
        grid_spec=pltpu.PrefetchScalarGridSpec(
            num_scalar_prefetch=0,
            grid=grid,
            in_specs=[
                pl.BlockSpec((1, TF), lambda j, i: (0, j)),    # seta row tile
                pl.BlockSpec((TB, 1), lambda j, i: (i, 0)),    # event column
                pl.BlockSpec((TB, TF), lambda j, i: (i, j)),   # A_last tile
            ],
            out_specs=pl.BlockSpec((TB, TF), lambda j, i: (i, j)),
        ),
        compiler_params=compiler_params,
        input_output_aliases=io_alias,
    )(seta_flat, ev2, a_flat)
    return out_flat.reshape(B, N, N)


def predict_A_reference(seta, A_last, event_list):
    """Plain-XLA equivalent (fused broadcast mul-add)."""
    return seta[None, :, :] * event_list[:, None, None] + A_last


def predict_A_forward_auto(seta, A_last, event_list, min_bytes=8 * 1024 * 1024):
    """Dispatch: XLA for tiny or relayout-prone shapes, Pallas 3-D path otherwise."""
    _, N, _ = A_last.shape
    nbytes = A_last.size * jnp.dtype(A_last.dtype).itemsize
    if nbytes < min_bytes or N % _LANE != 0:
        return predict_A_reference(seta, A_last, event_list)
    return predict_A_forward(seta, A_last, event_list)


def xavier_uniform(key, shape, dtype=jnp.float32):
    """Matches torch.nn.init.xavier_uniform_ for a 2-D parameter."""
    fan_in, fan_out = shape[1], shape[0]
    limit = jnp.sqrt(6.0 / (fan_in + fan_out))
    return jax.random.uniform(key, shape, dtype, minval=-limit, maxval=limit)


if __name__ == "__main__":
    key = jax.random.PRNGKey(0)

    # (batch, num_nodes, target_tile_bytes): covers the toy size, lane-unaligned
    # N, ragged lane tiles (F > max tile), ragged batch edge, and the 3-D
    # aligned path (single-tile and batch-tiled with seta reuse).
    cases = [
        (2, 16, _TARGET_TILE_BYTES),
        (5, 20, _TARGET_TILE_BYTES),
        (3, 91, _TARGET_TILE_BYTES),
        (10, 48, 64 * 1024),
        (4, 128, _TARGET_TILE_BYTES),
        (5, 128, 64 * 1024),
    ]
    for batch, num_nodes, tile_bytes in cases:
        key, k_seta, k_a, k_e = jax.random.split(key, 4)

        seta = xavier_uniform(k_seta, (num_nodes, num_nodes))
        A_last = jax.random.normal(k_a, (batch, num_nodes, num_nodes), jnp.float32)
        event_list = jax.random.normal(k_e, (batch,), jnp.float32)

        out = jax.block_until_ready(
            predict_A_forward(seta, A_last, event_list,
                              target_tile_bytes=tile_bytes))
        ref = predict_A_reference(seta, A_last, event_list)

        assert out.shape == (batch, num_nodes, num_nodes)
        assert jnp.allclose(out, ref, atol=1e-5, rtol=1e-5), (
            f"mismatch vs reference at B={batch}, N={num_nodes}")

    print("KERNEL_OK")
</pallas_src>

<mosaic_0001>
module attributes {stable_mosaic.version = 11 : i64} {
  func.func @_predict_A_kernel_2d(%arg0: i32, %arg1: i32, %arg2: memref<1x256xf32, #tpu.memory_space<vmem>>, %arg3: memref<2x1xf32, #tpu.memory_space<vmem>>, %arg4: memref<2x256xf32, #tpu.memory_space<vmem>>, %arg5: memref<2x256xf32, #tpu.memory_space<vmem>>) attributes {dimension_semantics = [#tpu.dimension_semantics<parallel>, #tpu.dimension_semantics<parallel>], iteration_bounds = array<i64: 1, 1>, scalar_prefetch = 0 : i64, scratch_operands = 0 : i64, tpu.core_type = #tpu.core_type<tc>, window_params = [{transform_indices = @transform_0, window_bounds = array<i64: 1, 256>}, {transform_indices = @transform_1, window_bounds = array<i64: 2, 1>}, {transform_indices = @transform_2, window_bounds = array<i64: 2, 256>}, {transform_indices = @transform_3, window_bounds = array<i64: 2, 256>}]} {
    %c0 = arith.constant 0 : index
    %c0_0 = arith.constant 0 : index
    %0 = vector.load %arg2[%c0, %c0_0] : memref<1x256xf32, #tpu.memory_space<vmem>>, vector<1x256xf32>
    %c0_1 = arith.constant 0 : index
    %c0_2 = arith.constant 0 : index
    %1 = vector.load %arg3[%c0_1, %c0_2] : memref<2x1xf32, #tpu.memory_space<vmem>>, vector<2x1xf32>
    %2 = vector.broadcast %0 : vector<1x256xf32> to vector<2x256xf32>
    %3 = vector.broadcast %1 : vector<2x1xf32> to vector<2x256xf32>
    %4 = arith.mulf %2, %3 : vector<2x256xf32>
    %c0_3 = arith.constant 0 : index
    %c0_4 = arith.constant 0 : index
    %5 = vector.load %arg4[%c0_3, %c0_4] : memref<2x256xf32, #tpu.memory_space<vmem>>, vector<2x256xf32>
    %6 = arith.addf %4, %5 : vector<2x256xf32>
    %c0_5 = arith.constant 0 : index
    %c0_6 = arith.constant 0 : index
    %7 = vector.load %arg5[%c0_5, %c0_6] : memref<2x256xf32, #tpu.memory_space<vmem>>, vector<2x256xf32>
    tpu.vector_store %arg5[%c0_5, %c0_6], %6 {strides = array<i32>} : memref<2x256xf32, #tpu.memory_space<vmem>>, vector<2x256xf32>,
    return
  }
  func.func @transform_0(%arg0: i32, %arg1: i32) -> (i32, i32) {
    %c0_i32 = arith.constant 0 : i32
    %c0_i32_0 = arith.constant 0 : i32
    return %c0_i32, %arg0 : i32, i32
  }
  func.func @transform_1(%arg0: i32, %arg1: i32) -> (i32, i32) {
    %c0_i32 = arith.constant 0 : i32
    %c0_i32_0 = arith.constant 0 : i32
    return %arg1, %c0_i32 : i32, i32
  }
  func.func @transform_2(%arg0: i32, %arg1: i32) -> (i32, i32) {
    %c0_i32 = arith.constant 0 : i32
    return %arg1, %arg0 : i32, i32
  }
  func.func @transform_3(%arg0: i32, %arg1: i32) -> (i32, i32) {
    %c0_i32 = arith.constant 0 : i32
    return %arg1, %arg0 : i32, i32
  }
}

</mosaic_0001>

<bundles_post_ra>
// kernel: tpu_custom_call.1
= control target key start
LH: loop header
LB: loop body
LE: loop exit
PB: predicated region body
PF: predicated region fallthrough
CT: control target
= control target key end

     0   :  { %v102_v1 = vmov 0   ;;  %s136_s0 = inlined_call_operand.vmem [shape: f32[1,256], index: 0, kind: input, shape index: {}]   ;;  %s137_s1 = inlined_call_operand.vmem [shape: f32[2,1], index: 1, kind: input, shape index: {}]   ;;  %s138_s2 = inlined_call_operand.vmem [shape: f32[2,256], index: 2, kind: input, shape index: {}]   ;;  %s139_s3 = inlined_call_operand.hbm [shape: f32[2,256], index: 3, kind: output, shape index: {}]  }
   0x1   :  { %v16_v0 = vld [vmem:[%s137_s1] sm:$0x3]  ;;  %79 = vset.pattern.permute.xlu0 %v102_v1 }
   0x2   :  { %8 = vsyncpa [#allocation3], 0  ;;  %30 = vperm.xlu0 %79, %v16_v0   ;;  %v18_v2 = vlaneseq  ;;  %v15_v6 = vld [vmem:[%s136_s0] sm:$0x3]  ;;  %s103_s1 = smov [#allocation2]  }
   0x3   :  { %v75_v7 = vld.sshfl [vmem:[%s138_s2] sm:$0x33 pattern:$0x76325410]  ;;  %s67_s18 = sshll.u32 %s103_s1, 4  ;;  %s68_s18 = int_to_ptr.vmem [resolvable:$true] %s67_s18 }
   0x4   :  { %v19_v3 = vshrl.u32 %v18_v2, 7  ;;  %v44_v10 = vcombine.high %v75_v7, %v75_v7  ;;  %s80_s19 = scalar_lea.vmem %s68_s18, 64  ;;  %p85_p1 = scmp.lt.s32.totalorder %s68_s18, %s68_s18 }
   0x5   :  { %p81_p0 = scmp.ne.s32.totalorder %s68_s18, %s80_s19  ;;  %p86_p2 = scmp.lt.s32.totalorder %s80_s19, %s80_s19 }
   0x6   :  { %v20_v4 = vsub.s32 0, %v19_v3  ;;  %v24_v5 = vsub.s32 1, %v19_v3 }
   0x7   :  { %p87_p3 = por %p86_p2, %p85_p1 }
   0x8   :  { %v21_v8 = vrot.slane %v15_v6, %v20_v4  ;;  %v25_v9 = vrot.slane %v15_v6, %v24_v5 }
   0x9   :  { %p88_p4 = pnand %p87_p3, %p81_p0 }
  0x7d   :  { %v31_v11 = vpop.permute.xlu0 %30 }
  0x7e   :  { %v33_v12 = vmul.f32 %v31_v11, %v21_v8  ;;  %v34_v13 = vmul.f32 %v31_v11, %v25_v9 }
  0x80   :  { %v47_v14 = vadd.f32 %v75_v7, %v33_v12  ;;  %v48_v15 = vadd.f32 %v44_v10, %v34_v13 }
  0x82   :  { %v51_v16 = vcombine.low %v47_v14, %v48_v15 }
  0x84   :  { %76 = vst.sshfl [vmem:[#allocation2] sm:$0x33 pattern:$0x76325410] %v51_v16 }
  0x85   :  { %91 = shalt.err (!%p88_p4)
}
  0x86   :  { %70 = dma.vmem_to_hbm [thread:$0]  %s68_s18, 64, %s139_s3, [#allocation3]  }
  0x87   :  { %100 = dma.done.wait [#allocation3], 64  }
  0x88   :  { %101 = vsyncadd [#allocation3], 4294967232 }
  0x89   :  { %74 = vsyncpa [#allocation3], 1 }

</bundles_post_ra>
